<compile_context>
chip_gen: v7x
topology: tpu7x:2x2x1
jax: 0.10.0
libtpu: 0.0.40
codegen_flags: <defaults>
</compile_context>

<pallas_src>
import functools
import jax
import jax.numpy as jnp
from jax.experimental import pallas as pl
from jax.experimental.pallas import tpu as pltpu


def _round_up(x, m):
    return ((x + m - 1) // m) * m


# Target VMEM for pipelined buffers; fits every generation (v7x has 64 MiB physical).
_VMEM_BUDGET = 32 * 1024 * 1024


# ----------------- fused (LayerNorm) -> Linear (+bias/+gelu/+residual) -----------------

def _fused_linear_kernel(*refs, use_ln, use_bias, activation, add_residual, eps):
    it = iter(refs)
    x_ref = next(it)
    g_ref = next(it) if use_ln else None
    b_ref = next(it) if use_ln else None
    w_ref = next(it)
    bias_ref = next(it) if use_bias else None
    r_ref = next(it) if add_residual else None
    o_ref = next(it)
    xn_ref = next(it) if use_ln else None     # VMEM scratch: normalized rows, reused over j

    if use_ln:
        # LayerNorm once per row tile (first Kout tile), reused for the remaining Kout tiles.
        @pl.when(pl.program_id(1) == 0)
        def _():
            xf = x_ref[...].astype(jnp.float32)
            mean = jnp.mean(xf, axis=-1, keepdims=True)
            xc = xf - mean
            var = jnp.mean(xc * xc, axis=-1, keepdims=True)
            xn = xc * jax.lax.rsqrt(var + eps)
            xn = xn * g_ref[...].astype(jnp.float32) + b_ref[...].astype(jnp.float32)
            xn_ref[...] = xn.astype(xn_ref.dtype)
        lhs = xn_ref[...]
    else:
        lhs = x_ref[...]

    # MXU consumes the native dtype directly; accumulate in f32.
    y = jnp.dot(lhs, w_ref[...], preferred_element_type=jnp.float32)
    if use_bias:
        y = y + bias_ref[...].astype(jnp.float32)
    if activation == "gelu":
        y = jax.nn.gelu(y, approximate=False)      # exact erf, matches torch nn.GELU
    if add_residual:
        y = y + r_ref[...].astype(jnp.float32)
    o_ref[...] = y.astype(o_ref.dtype)


def _pick_linear_tiles(M, Kin, Kout, itemsize, add_residual, use_ln):
    """Budget-derived (tm, m_pad, tn, kout_pad).  Weight tile is (Kin, tn), double-buffered."""
    # Output-column tile: cap so the double-buffered weight tile stays under half the budget.
    tn_cap = max(128, (int(_VMEM_BUDGET // 2 // max(2 * Kin * itemsize, 1)) // 128) * 128)
    tn_target = min(512, tn_cap)
    if Kout <= tn_target:
        tn, kout_pad = Kout, Kout
    else:
        tn = None
        for cand in range(tn_target, 127, -128):
            if Kout % cand == 0:
                tn = cand
                break
        if tn is None:
            tn = tn_target
        kout_pad = _round_up(Kout, tn)

    # Row tile from the remaining budget (x + out (+ residual) double-buffered, LN scratch).
    w_bytes = 2 * Kin * tn * itemsize
    per_row = (2 * Kin + (2 + (2 if add_residual else 0)) * tn) * itemsize
    if use_ln:
        per_row += Kin * itemsize
    tm = max(8, ((max(_VMEM_BUDGET - w_bytes, per_row * 8)) // per_row) // 8 * 8)
    tm = min(tm, 1024, _round_up(M, 8))
    # Keep >= 2 row tiles so the "parallel" axis can split across v7x's 2 TensorCores.
    if _round_up(M, tm) // tm < 2 and M > 8:
        tm = _round_up((M + 1) // 2, 8)
    m_pad = _round_up(M, tm)
    return tm, m_pad, tn, kout_pad


def fused_linear(x2d, w, *, gamma=None, beta=None, bias=None, residual=None,
                 activation=None, eps=1e-5):
    """(optional LayerNorm) -> x @ w (+bias) (+GELU) (+residual), tiled over rows and Kout."""
    M, Kin = x2d.shape
    Kw, Kout = w.shape
    assert Kin == Kw
    use_ln = gamma is not None
    use_bias = bias is not None
    add_residual = residual is not None
    itemsize = jnp.dtype(x2d.dtype).itemsize

    tm, m_pad, tn, kout_pad = _pick_linear_tiles(M, Kin, Kout, itemsize, add_residual, use_ln)

    if m_pad != M:
        x2d = jnp.pad(x2d, ((0, m_pad - M), (0, 0)))
        if add_residual:
            residual = jnp.pad(residual, ((0, m_pad - M), (0, 0)))
    if kout_pad != Kout:
        w = jnp.pad(w, ((0, 0), (0, kout_pad - Kout)))
        if use_bias:
            bias = jnp.pad(bias, ((0, kout_pad - Kout),))
        if add_residual:
            residual = jnp.pad(residual, ((0, 0), (0, kout_pad - Kout)))

    grid = (m_pad // tm, kout_pad // tn)

    in_specs = [pl.BlockSpec((tm, Kin), lambda i, j: (i, 0))]
    args = [x2d]
    if use_ln:
        # TODO(synk): grid-invariant operands (gamma/beta/bias) could be single-buffered via
        # pipeline_mode=pl.Buffered(1); they are tiny so double-buffering is kept for safety.
        in_specs += [pl.BlockSpec((1, Kin), lambda i, j: (0, 0)),
                     pl.BlockSpec((1, Kin), lambda i, j: (0, 0))]
        args += [gamma.reshape(1, Kin), beta.reshape(1, Kin)]
    in_specs.append(pl.BlockSpec((Kin, tn), lambda i, j: (0, j)))   # weight tiled over Kout
    args.append(w)
    if use_bias:
        in_specs.append(pl.BlockSpec((1, tn), lambda i, j: (0, j)))
        args.append(bias.reshape(1, kout_pad))
    if add_residual:
        in_specs.append(pl.BlockSpec((tm, tn), lambda i, j: (i, j)))
        args.append(residual)

    scratch_shapes = (pltpu.VMEM((tm, Kin), x2d.dtype),) if use_ln else ()

    footprint = (2 * tm * Kin + 2 * Kin * tn + 2 * tm * tn) * itemsize
    if add_residual:
        footprint += 2 * tm * tn * itemsize
    if use_ln:
        footprint += (tm + 4) * Kin * itemsize
    vmem_limit = int(min(48 * 2**20, max(footprint + 8 * 2**20, 32 * 2**20)))

    out = pl.pallas_call(
        functools.partial(_fused_linear_kernel, use_ln=use_ln, use_bias=use_bias,
                          activation=activation, add_residual=add_residual, eps=eps),
        out_shape=jax.ShapeDtypeStruct((m_pad, kout_pad), x2d.dtype),
        grid=grid,
        in_specs=in_specs,
        out_specs=pl.BlockSpec((tm, tn), lambda i, j: (i, j)),
        scratch_shapes=scratch_shapes,
        compiler_params=pltpu.CompilerParams(
            dimension_semantics=("parallel", "arbitrary"),
            vmem_limit_bytes=vmem_limit),
    )(*args)
    if m_pad != M or kout_pad != Kout:
        out = out[:M, :Kout]
    return out


# ------------------------------ grouped attention core ---------------------------------

def _group_attn_kernel(qkv_ref, o_ref, *, num_heads, head_dim, scale):
    # qkv_ref: (tg, n, 3C) head-major slab: per head a contiguous [q|k|v] chunk of 3*hd lanes.
    # o_ref:   (tg, n, C) lane-dense output in standard head-concatenated order.
    hd = head_dim
    for h in range(num_heads):                         # static unroll over heads
        base = 3 * hd * h
        chunk = qkv_ref[:, :, base:base + 3 * hd]      # one dense per-head load
        q = chunk[:, :, :hd] * scale                   # fold scale into q (n*hd << n*n work)
        k = chunk[:, :, hd:2 * hd]
        v = chunk[:, :, 2 * hd:]
        s = jnp.einsum("tqd,tkd->tqk", q, k, preferred_element_type=jnp.float32)
        s = s - jnp.max(s, axis=-1, keepdims=True)
        p = jnp.exp(s)
        p = p * pl.reciprocal(jnp.sum(p, axis=-1, keepdims=True), approx=True)
        oh = jnp.einsum("tqk,tkd->tqd", p.astype(v.dtype), v,
                        preferred_element_type=jnp.float32)
        # Write this head straight into its output column slice: no concatenate, only one
        # head's f32 accumulator live at a time.
        o_ref[:, :, h * hd:(h + 1) * hd] = oh.astype(o_ref.dtype)


def grouped_attention(qkv_grouped, *, num_heads, scale):
    BG, n, C3 = qkv_grouped.shape
    C = C3 // 3
    head_dim = C // num_heads
    itemsize = jnp.dtype(qkv_grouped.dtype).itemsize

    # Budget-derived number of (batch, group) tiles per step: double-buffered in/out slabs
    # plus f32 working set; capped at BG//2 so v7x's two TensorCores both get grid steps.
    per_tile = (2 * n * C3 + 2 * n * C) * itemsize + 4 * n * (n + C)
    cap = max(1, _VMEM_BUDGET // per_tile)
    if BG >= 2:
        cap = min(cap, max(1, BG // 2))
    cap = min(cap, BG)
    tg = 1
    for cand in range(int(cap), 0, -1):
        if BG % cand == 0:
            tg = cand
            break
    vmem_limit = int(min(48 * 2**20, max(tg * per_tile + 8 * 2**20, 32 * 2**20)))

    return pl.pallas_call(
        functools.partial(_group_attn_kernel, num_heads=num_heads,
                          head_dim=head_dim, scale=scale),
        out_shape=jax.ShapeDtypeStruct((BG, n, C), qkv_grouped.dtype),
        grid=(BG // tg,),
        in_specs=[pl.BlockSpec((tg, n, C3), lambda i: (i, 0, 0))],
        out_specs=pl.BlockSpec((tg, n, C), lambda i: (i, 0, 0)),
        compiler_params=pltpu.CompilerParams(
            dimension_semantics=("parallel",),
            vmem_limit_bytes=vmem_limit),
    )(qkv_grouped)


# -------------------------------- Group_Block forward ----------------------------------

def group_block_forward(x, params, *, num_groups, num_heads, perm_key):
    B, N, C = x.shape
    G = num_groups
    n = N // G
    head_dim = C // num_heads
    scale = head_dim ** (-0.5)

    x2 = x.reshape(B * N, C)

    # Head-major [h][q|k|v][hd] column order for the qkv weight, so each head's q/k/v is one
    # contiguous 3*hd lane chunk inside the attention kernel.  Done once, outside the kernels
    # (in a real model this is a one-time parameter re-layout); output/proj layouts unchanged.
    hm_cols = jnp.arange(3 * C).reshape(3, num_heads, head_dim).transpose(1, 0, 2).reshape(-1)
    qkv_w_hm = jnp.take(params["qkv_w"], hm_cols, axis=1)

    # ---------------- attention branch ----------------
    if G != 1:
        # TODO(synk): torch.randperm redraws per forward; here it is deterministic from perm_key.
        # TODO(synk): fold this gather and the inverse gather below into the adjacent kernels'
        # DMAs (scalar-prefetch idx + per-row async copies) to drop two (B, N, C) HBM round trips.
        idx = jax.random.permutation(perm_key, N)
        inv = jnp.argsort(idx)
        xp2 = x[:, idx, :].reshape(B * N, C)        # tokens in permuted (grouped) order
    else:
        xp2 = x2

    # fused LayerNorm(norm1) + qkv projection (no bias), head-major output columns
    qkv = fused_linear(xp2, qkv_w_hm,
                       gamma=params["norm1_g"], beta=params["norm1_b"])    # (B*N, 3C)

    # (B*N, 3C) -> (B*G, n, 3C) is a free contiguous reshape (groups-major order)
    attn = grouped_attention(qkv.reshape(B * G, n, 3 * C),
                             num_heads=num_heads, scale=scale)             # (B*G, n, C)

    # fused proj + bias + residual, still in permuted order (residual = permuted x);
    # a single inverse gather then restores the original token order.
    y_perm = fused_linear(attn.reshape(B * N, C), params["proj_w"],
                          bias=params["proj_b"], residual=xp2)             # (B*N, C)
    if G != 1:
        xa = y_perm.reshape(B, N, C)[:, inv, :].reshape(B * N, C)
    else:
        xa = y_perm

    # ---------------- MLP branch ----------------
    # TODO(synk): on v6e/v7x cast activations/weights of the large matmuls to bf16 (f32 acc is
    # already set); kept f32 here to preserve bit-level behavior of the f32 module.
    h = fused_linear(xa, params["fc1_w"],
                     gamma=params["norm2_g"], beta=params["norm2_b"],
                     bias=params["fc1_b"], activation="gelu")
    out = fused_linear(h, params["fc2_w"], bias=params["fc2_b"], residual=xa)
    return out.reshape(B, N, C)


# -------------------------------------- Reference ---------------------------------------

def _ref_forward(x, params, *, num_groups, num_heads, perm_key):
    B, N, C = x.shape
    H, hd, n = num_heads, C // num_heads, N // num_groups
    scale = hd ** (-0.5)

    def ln(v, g, b):
        m = jnp.mean(v, -1, keepdims=True)
        s = jnp.mean((v - m) ** 2, -1, keepdims=True)
        return (v - m) * jax.lax.rsqrt(s + 1e-5) * g + b

    h = ln(x, params["norm1_g"], params["norm1_b"])
    idx = jax.random.permutation(perm_key, N)
    inv = jnp.argsort(idx)
    if num_groups != 1:
        h = h[:, idx, :]
    qkv = (h @ params["qkv_w"]).reshape(B, num_groups, n, 3, H, hd)
    qkv = qkv.transpose(3, 0, 1, 4, 2, 5)
    q, k, v = qkv[0], qkv[1], qkv[2]
    s = jnp.einsum("bghqd,bghkd->bghqk", q, k) * scale
    p = jax.nn.softmax(s, axis=-1)
    o = jnp.einsum("bghqk,bghkd->bghqd", p, v)
    o = o.transpose(0, 1, 3, 2, 4).reshape(B, N, C)
    if num_groups != 1:
        o = o[:, inv, :]
    x = x + o @ params["proj_w"] + params["proj_b"]
    h2 = ln(x, params["norm2_g"], params["norm2_b"])
    h2 = jax.nn.gelu(h2 @ params["fc1_w"] + params["fc1_b"], approximate=False)
    x = x + h2 @ params["fc2_w"] + params["fc2_b"]
    return x


# ----------------------------------------- Main -----------------------------------------

if __name__ == "__main__":
    B, N, C = 2, 24, 32
    num_heads = 8          # Group_Attention hardcodes num_heads=8
    num_groups = 3         # N must be divisible by num_groups
    mlp_hidden = int(C * 4.0)

    root = jax.random.PRNGKey(0)
    kx, kqkv, kproj, kfc1, kfc2, kperm = jax.random.split(root, 6)

    params = {
        "norm1_g": jnp.ones((C,), jnp.float32),
        "norm1_b": jnp.zeros((C,), jnp.float32),
        "qkv_w":  0.05 * jax.random.normal(kqkv, (C, 3 * C), jnp.float32),
        "proj_w": 0.05 * jax.random.normal(kproj, (C, C), jnp.float32),
        "proj_b": jnp.zeros((C,), jnp.float32),
        "norm2_g": jnp.ones((C,), jnp.float32),
        "norm2_b": jnp.zeros((C,), jnp.float32),
        "fc1_w":  0.05 * jax.random.normal(kfc1, (C, mlp_hidden), jnp.float32),
        "fc1_b":  jnp.zeros((mlp_hidden,), jnp.float32),
        "fc2_w":  0.05 * jax.random.normal(kfc2, (mlp_hidden, C), jnp.float32),
        "fc2_b":  jnp.zeros((C,), jnp.float32),
    }

    x = jax.random.normal(kx, (B, N, C), jnp.float32)

    out = group_block_forward(x, params, num_groups=num_groups,
                              num_heads=num_heads, perm_key=kperm)
    out = jax.block_until_ready(out)

    ref = _ref_forward(x, params, num_groups=num_groups,
                       num_heads=num_heads, perm_key=kperm)

    assert out.shape == (B, N, C)
    assert bool(jnp.all(jnp.isfinite(out)))
    # Tolerance accounts for the EUP approximate reciprocal in the softmax normalization.
    err = float(jnp.max(jnp.abs(out - ref)))
    assert jnp.allclose(out, ref, atol=2e-3, rtol=2e-3), err
    print("KERNEL_OK")
</pallas_src>

<mosaic_0001>
module attributes {stable_mosaic.version = 11 : i64} {
  func.func @_fused_linear_kernel(%arg0: i32, %arg1: i32, %arg2: memref<24x32xf32, #tpu.memory_space<vmem>>, %arg3: memref<1x32xf32, #tpu.memory_space<vmem>>, %arg4: memref<1x32xf32, #tpu.memory_space<vmem>>, %arg5: memref<32x96xf32, #tpu.memory_space<vmem>>, %arg6: memref<24x96xf32, #tpu.memory_space<vmem>>, %arg7: memref<24x32xf32, #tpu.memory_space<vmem>>) attributes {dimension_semantics = [#tpu.dimension_semantics<parallel>, #tpu.dimension_semantics<arbitrary>], iteration_bounds = array<i64: 2, 1>, scalar_prefetch = 0 : i64, scratch_operands = 1 : i64, tpu.core_type = #tpu.core_type<tc>, window_params = [{transform_indices = @transform_0, window_bounds = array<i64: 24, 32>}, {pipeline_mode = #tpu.pipeline_mode<synchronous>, transform_indices = @transform_1, window_bounds = array<i64: 1, 32>}, {pipeline_mode = #tpu.pipeline_mode<synchronous>, transform_indices = @transform_2, window_bounds = array<i64: 1, 32>}, {transform_indices = @transform_3, window_bounds = array<i64: 32, 96>}, {transform_indices = @transform_4, window_bounds = array<i64: 24, 96>}]} {
    %c0_i32 = arith.constant 0 : i32
    %0 = arith.cmpi eq, %arg1, %c0_i32 : i32
    %1 = arith.extui %0 : i1 to i32
    %c0_i32_0 = arith.constant 0 : i32
    %2 = arith.cmpi ne, %1, %c0_i32_0 : i32
    scf.if %2 {
      %c0_6 = arith.constant 0 : index
      %c0_7 = arith.constant 0 : index
      %7 = vector.load %arg2[%c0_6, %c0_7] : memref<24x32xf32, #tpu.memory_space<vmem>>, vector<24x32xf32>
      %cst_8 = arith.constant dense<0.000000e+00> : vector<24xf32>
      %8 = vector.multi_reduction <add>, %7, %cst_8 [1] : vector<24x32xf32> to vector<24xf32>
      %9 = vector.shape_cast %8 : vector<24xf32> to vector<24x1xf32>
      %cst_9 = arith.constant 3.200000e+01 : f32
      %10 = vector.broadcast %cst_9 : f32 to vector<24x1xf32>
      %11 = arith.divf %9, %10 : vector<24x1xf32>
      %12 = vector.broadcast %11 : vector<24x1xf32> to vector<24x32xf32>
      %13 = arith.subf %7, %12 : vector<24x32xf32>
      %14 = arith.mulf %13, %13 : vector<24x32xf32>
      %cst_10 = arith.constant dense<0.000000e+00> : vector<24xf32>
      %15 = vector.multi_reduction <add>, %14, %cst_10 [1] : vector<24x32xf32> to vector<24xf32>
      %16 = vector.shape_cast %15 : vector<24xf32> to vector<24x1xf32>
      %cst_11 = arith.constant 3.200000e+01 : f32
      %17 = vector.broadcast %cst_11 : f32 to vector<24x1xf32>
      %18 = arith.divf %16, %17 : vector<24x1xf32>
      %cst_12 = arith.constant 9.99999974E-6 : f32
      %19 = vector.broadcast %cst_12 : f32 to vector<24x1xf32>
      %20 = arith.addf %18, %19 : vector<24x1xf32>
      %21 = math.rsqrt %20 : vector<24x1xf32>
      %22 = vector.broadcast %21 : vector<24x1xf32> to vector<24x32xf32>
      %23 = arith.mulf %13, %22 : vector<24x32xf32>
      %c0_13 = arith.constant 0 : index
      %c0_14 = arith.constant 0 : index
      %24 = vector.load %arg3[%c0_13, %c0_14] : memref<1x32xf32, #tpu.memory_space<vmem>>, vector<1x32xf32>
      %25 = vector.broadcast %24 : vector<1x32xf32> to vector<24x32xf32>
      %26 = arith.mulf %23, %25 : vector<24x32xf32>
      %c0_15 = arith.constant 0 : index
      %c0_16 = arith.constant 0 : index
      %27 = vector.load %arg4[%c0_15, %c0_16] : memref<1x32xf32, #tpu.memory_space<vmem>>, vector<1x32xf32>
      %28 = vector.broadcast %27 : vector<1x32xf32> to vector<24x32xf32>
      %29 = arith.addf %26, %28 : vector<24x32xf32>
      %c0_17 = arith.constant 0 : index
      %c0_18 = arith.constant 0 : index
      %30 = vector.load %arg7[%c0_17, %c0_18] : memref<24x32xf32, #tpu.memory_space<vmem>>, vector<24x32xf32>
      tpu.vector_store %arg7[%c0_17, %c0_18], %29 {strides = array<i32>} : memref<24x32xf32, #tpu.memory_space<vmem>>, vector<24x32xf32>,
    } else {
    }
    %c0 = arith.constant 0 : index
    %c0_1 = arith.constant 0 : index
    %3 = vector.load %arg7[%c0, %c0_1] : memref<24x32xf32, #tpu.memory_space<vmem>>, vector<24x32xf32>
    %c0_2 = arith.constant 0 : index
    %c0_3 = arith.constant 0 : index
    %4 = vector.load %arg5[%c0_2, %c0_3] : memref<32x96xf32, #tpu.memory_space<vmem>>, vector<32x96xf32>
    %cst = arith.constant dense<0.000000e+00> : vector<24x96xf32>
    %5 = tpu.matmul %3, %4, %cst {dimension_numbers = #tpu.dot_dimension_numbers<[1], [0], [0], [1], [0, 0, 1, 1], [], []>} : vector<24x32xf32>, vector<32x96xf32>, vector<24x96xf32> -> vector<24x96xf32>
    %c0_4 = arith.constant 0 : index
    %c0_5 = arith.constant 0 : index
    %6 = vector.load %arg6[%c0_4, %c0_5] : memref<24x96xf32, #tpu.memory_space<vmem>>, vector<24x96xf32>
    tpu.vector_store %arg6[%c0_4, %c0_5], %5 {strides = array<i32>} : memref<24x96xf32, #tpu.memory_space<vmem>>, vector<24x96xf32>,
    return
  }
  func.func @transform_0(%arg0: i32, %arg1: i32) -> (i32, i32) {
    %c0_i32 = arith.constant 0 : i32
    %c0_i32_0 = arith.constant 0 : i32
    return %arg0, %c0_i32 : i32, i32
  }
  func.func @transform_1(%arg0: i32, %arg1: i32) -> (i32, i32) {
    %c0_i32 = arith.constant 0 : i32
    %c0_i32_0 = arith.constant 0 : i32
    %c0_i32_1 = arith.constant 0 : i32
    return %c0_i32, %c0_i32_0 : i32, i32
  }
  func.func @transform_2(%arg0: i32, %arg1: i32) -> (i32, i32) {
    %c0_i32 = arith.constant 0 : i32
    %c0_i32_0 = arith.constant 0 : i32
    %c0_i32_1 = arith.constant 0 : i32
    return %c0_i32, %c0_i32_0 : i32, i32
  }
  func.func @transform_3(%arg0: i32, %arg1: i32) -> (i32, i32) {
    %c0_i32 = arith.constant 0 : i32
    %c0_i32_0 = arith.constant 0 : i32
    return %c0_i32, %arg1 : i32, i32
  }
  func.func @transform_4(%arg0: i32, %arg1: i32) -> (i32, i32) {
    %c0_i32 = arith.constant 0 : i32
    return %arg0, %arg1 : i32, i32
  }
}

</mosaic_0001>

<bundles_post_ra>
// kernel: tpu_custom_call.1
= control target key start
LH: loop header
LB: loop body
LE: loop exit
PB: predicated region body
PF: predicated region fallthrough
CT: control target
= control target key end

     0   :  { %9 = vsyncpa [#allocation4], 0  ;;  %s879_s0 = inlined_call_operand.vmem [shape: f32[48,32], index: 0, kind: input, shape index: {}]   ;;  %s880_s1 = inlined_call_operand.vmem [shape: f32[1,32], index: 1, kind: input, shape index: {}]   ;;  %s881_s2 = inlined_call_operand.vmem [shape: f32[1,32], index: 2, kind: input, shape index: {}]   ;;  %s882_s3 = inlined_call_operand.vmem [shape: f32[32,96], index: 3, kind: input, shape index: {}]   ;;  %s883_s4 = inlined_call_operand.hbm [shape: f32[48,96], index: 4, kind: output, shape index: {}]  }
   0x1   :  { %11 = vsyncpa [#allocation4 + $0x1], 0  ;;  %s732_s15 = smov 0   ;;  %s734_s16 = smov 0  }
   0x2   :  { %s736_s17 = smov 0   ;;  %s738_s18 = smov 0  }
   0x3   :  { %s740_s19 = smov 0   ;;  %s742_s20 = smov 0  }
   0x4 LB: > { %s504_s21 = sadd.s32 4294967295, %s699_s20   ;;  %s505_s22 = sadd.s32 4294967294, %s699_s20   ;;  %s699_s20 = sphi %s742_s20, %s17_s20   ;;  %s695_s19 = sphi %s740_s19, %s890_s19   ;;  %s691_s18 = sphi %s738_s18, %s889_s18   ;;  %s687_s17 = sphi %s736_s17, %s888_s17   ;;  %s683_s16 = sphi %s734_s16, %s887_s16   ;;  %s679_s15 = sphi %s732_s15, %s886_s15  }
   0x5   : > { %s29_s23 = sadd.s32 1, %s695_s19  ;;  %s132_s24 = sadd.s32 1, %s687_s17 }
   0x6   : > { %p31_p0 = scmp.ge.s32.totalorder %s29_s23, 2  ;;  %p142_p1 = scmp.ne.s32.totalorder %s687_s17, %s683_s16 }
   0x7   : > { %p143_p2 = scmp.eq.s32.totalorder %s504_s21, 1  ;;  %p148_p3 = scmp.ne.s32.totalorder %s683_s16, %s679_s15 }
   0x8   : > { %s892_s23 = smov (%p31_p0, %s29_s23), 0  ;;  %p149_p5 = scmp.eq.s32.totalorder %s505_s22, 1 }
   0x9   : > { %p772_p4 = por %p143_p2, %p142_p1  ;;  %s127_s26 = ssub.s32 %s695_s19, %s892_s23 }
   0xa   : > { %p509_p6 = scmp.ge.s32.totalorder %s699_s20, 1  ;;  %p130_p7 = scmp.eq.s32.totalorder %s127_s26, 0 }
   0xb   : > { %p779_p8 = por %p149_p5, %p148_p3  ;;  %p189_p9 = scmp.lt.s32.totalorder %s699_s20, 3 }
   0xc   : > { %s785_s28 = scalar_select %p130_p7, %s687_s17, %s132_s24  }
   0xd   : > { %p190_p10 = pnand %p509_p6, %p189_p9 }
   0xe   : > { %s219_s29 = smul.u32 (!%p190_p10), 3, %s691_s18  ;;  %vm237_vm0 = vcmask (!%p190_p10), 261120   ;;  %v304_v21 = vld [vmem:[%s882_s3] sm:$0xff] (!%p190_p10)  ;;  %v305_v22 = vld [vmem:[%s882_s3 + $0x8] sm:$0xff] (!%p190_p10)  ;;  %v701_v24 = vmov (!%p190_p10), 0.0|0.0   ;;  %v306_v25 = vld [vmem:[%s882_s3 + $0x10] sm:$0xff] (!%p190_p10) }
   0xf   : > { %193 = sbr.rel (%p190_p10) target bundleno = 579 (0x243), region = 36  ;;  %v545_v23 = vpack.c.bf16 (!%p190_p10), %v305_v22, %v304_v21  ;;  %550 = vmatprep.subr.bf16.mxu1 (!%p190_p10), %v701_v24  ;;  %544 = vmatprep.subr.bf16.mxu0 (!%p190_p10), %v701_v24  ;;  %v307_v26 = vld [vmem:[%s882_s3 + $0x18] sm:$0xff] (!%p190_p10)  ;;  %vm702_vm1 = vmmov (!%p190_p10), 0   ;;  %v703_v28 = vmov (!%p190_p10), 0.0   ;;  %v511_v39 = vld [vmem:[%s880_s1] ss:$0 sm:$0xff] (!%p190_p10) }
  0x10   : > { %p220_p11 = scmp.lt.s32.totalorder (!%p190_p10), %s219_s29, 5  ;;  %v548_v27 = vpack.c.bf16 (!%p190_p10), %v307_v26, %v306_v25  ;;  %538 = vmatprep.mubr.msk.f32.mxu1 (!%p190_p10), %vm702_vm1, %v703_v28  ;;  %535 = vmatprep.mubr.msk.f32.mxu0 (!%p190_p10), %vm702_vm1, %v703_v28  ;;  %v512_v41 = vld [vmem:[%s881_s2] ss:$0 sm:$0xff] (!%p190_p10)  ;;  %vm398_vm2 = vcmask (!%p190_p10), 785408   ;;  %s519_s6 = smul.u32 (!%p190_p10), 384, %s691_s18 }
  0x11   : > { %552 = vmatpush3.bf16.msra.mxu1 (!%p190_p10), %v545_v23  ;;  %546 = vmatpush3.bf16.msra.mxu0 (!%p190_p10), %v545_v23  ;;  %s704_s13 = smov (!%p190_p10), [#allocation3]  }
  0x12   : > { %551 = vmatprep.subr.bf16.mxu1 (!%p190_p10), %v701_v24  ;;  %547 = vmatprep.subr.bf16.mxu0 (!%p190_p10), %v701_v24  ;;  %s831_s11 = scalar_lea.hbm (!%p190_p10), %s883_s4, %s519_s6  ;;  %s625_s14 = sshll.u32 (!%p190_p10), %s704_s13, 4  ;;  %s626_s14 = int_to_ptr.vmem [resolvable:$false] %s625_s14 }
  0x13   : > { %s627_s21 = scalar_lea.vmem (!%p190_p10), %s626_s14, 768 }
  0x15   : > { %553 = vmatpush3.bf16.msra.mxu1 (!%p190_p10), %v548_v27  ;;  %549 = vmatpush3.bf16.msra.mxu0 (!%p190_p10), %v548_v27 }
  0x16   : > { %s894_s29 = smov (!%p220_p11, %s219_s29), 5 }
  0x17   : > { %s510_s30 = sshll.u32 %s894_s29, 3 }
  0x18   : > { %s223_s7 = scalar_lea.vmem %s879_s0, %s510_s30  ;;  %s216_s30 = sand.u32 1, %s683_s16  }
  0x19   : > { %v235_v0 = vld [vmem:[%s223_s7 + $0x8] sm:$0xff]  ;;  %v236_v1 = vld [vmem:[%s223_s7 + $0x10] sm:$0xff]  ;;  %v234_v2 = vld [vmem:[%s223_s7] sm:$0xff]  ;;  %s554_s5 = smul.u32 24, %s216_s30  ;;  %s833_s18 = scalar_lea.sflag [#allocation4], %s216_s30 }
  0x1a   : > { %v241_v3 = vsel %vm237_vm0, %v235_v0, 0.0  ;;  %v244_v4 = vsel %vm237_vm0, %v236_v1, 0.0  ;;  %v238_v5 = vsel %vm237_vm0, %v234_v2, 0.0 }
  0x1b   : > { %242 = vadd.xlane.f32.xlu0 %v241_v3  ;;  %245 = vadd.xlane.f32.xlu1 %v244_v4  ;;  %s218_s7 = scalar_lea.vmem [#allocation3], %s554_s5 }
  0x1c   : > { %s417_s8 = sshll.u32 %s218_s7, 4  ;;  %s826_s8 = int_to_ptr.vmem [resolvable:$true] %s417_s8 }
  0x1d   : > { %s621_s12 = scalar_lea.vmem %s826_s8, 384  ;;  %p628_p1 = scmp.lt.s32.totalorder %s826_s8, %s626_s14 }
  0x1e   : > { %p622_p12 = scmp.ne.s32.totalorder %s826_s8, %s621_s12  ;;  %p629_p2 = scmp.lt.s32.totalorder %s627_s21, %s621_s12 }
  0x1f   : > { %239 = vadd.xlane.f32.xlu0 %v238_v5 }
  0x20   : > { %p623_p13 = pnand %p622_p12, %p772_p4  ;;  %p630_p3 = por %p629_p2, %p628_p1 }
  0x22   : > { %p624_p0 = pneg %p623_p13 }
  0x24   : > { %p631_p5 = pnand %p630_p3, %p624_p0 }
  0xa8   : > { %v243_v6 = vpop.xlane.xlu0 %242  ;;  %v246_v7 = vpop.xlane.xlu1 %245 }
  0xa9   : > { %v249_v8 = vmul.f32 0.03125, %v243_v6  ;;  %v250_v9 = vmul.f32 0.03125, %v246_v7 }
  0xab   : > { %v252_v10 = vsub.f32 %v235_v0, %v249_v8  ;;  %v253_v11 = vsub.f32 %v236_v1, %v250_v9 }
  0xac   : > { %v240_v12 = vpop.xlane.xlu0 %239 }
  0xad   : > { %v248_v13 = vmul.f32 0.03125, %v240_v12  ;;  %v255_v14 = vmul.f32 %v252_v10, %v252_v10  ;;  %v256_v15 = vmul.f32 %v253_v11, %v253_v11 }
  0xaf   : > { %v251_v16 = vsub.f32 %v234_v2, %v248_v13  ;;  %v260_v17 = vsel %vm237_vm0, %v255_v14, 0.0  ;;  %v263_v18 = vsel %vm237_vm0, %v256_v15, 0.0 }
  0xb0   : > { %261 = vadd.xlane.f32.xlu1 %v260_v17 }
  0xb1   : > { %v254_v19 = vmul.f32 %v251_v16, %v251_v16 }
  0xb3   : > { %v257_v20 = vsel %vm237_vm0, %v254_v19, 0.0 }
  0xb4   : > { %264 = vadd.xlane.f32.xlu1 %v263_v18  ;;  %258 = vadd.xlane.f32.xlu0 %v257_v20 }
 0x13d   : > { %v262_v29 = vpop.xlane.xlu1 %261 }
 0x13e   : > { %v267_v30 = vmul.f32 0.03125, %v262_v29 }
 0x140   : > { %v270_v31 = vadd.f32 1e-05, %v267_v30 }
 0x141   : > { %v265_v32 = vpop.xlane.xlu1 %264  ;;  %v259_v33 = vpop.xlane.xlu0 %258 }
 0x142   : > { %615 = vrsqrt.f32 %v270_v31  ;;  %v268_v34 = vmul.f32 0.03125, %v265_v32  ;;  %v266_v35 = vmul.f32 0.03125, %v259_v33 }
 0x144   : > { %v271_v36 = vadd.f32 1e-05, %v268_v34  ;;  %v269_v37 = vadd.f32 1e-05, %v266_v35 }
 0x146   : > { %617 = vrsqrt.f32 %v271_v36 }
 0x147   : > { %619 = vrsqrt.f32 %v269_v37 }
 0x14c   : > { %v616_v38 = vpop.eup %615 }
 0x14d   : > { %v276_v40 = vmul.f32 %v616_v38, %v252_v10 }
 0x14f   : > { %v286_v42 = vmul.f32 %v511_v39, %v276_v40 }
 0x150   : > { %v618_v43 = vpop.eup %617 }
 0x151   : > { %v620_v44 = vpop.eup %619  ;;  %v296_v45 = vadd.f32 %v512_v41, %v286_v42  ;;  %v277_v46 = vmul.f32 %v618_v43, %v253_v11 }
 0x152   : > { %v275_v47 = vmul.f32 %v620_v44, %v251_v16 }
 0x153   : > { %299 = vst.msk [vmem:[#allocation2 + $0x8] sm:$0xff] %vm237_vm0, %v296_v45  ;;  %v287_v48 = vmul.f32 %v511_v39, %v277_v46 }
 0x154   : > { %v285_v49 = vmul.f32 %v511_v39, %v275_v47 }
 0x155   : > { %v297_v50 = vadd.f32 %v512_v41, %v287_v48 }
 0x156   : > { %v295_v51 = vadd.f32 %v512_v41, %v285_v49 }
 0x157   : > { %300 = vst.msk [vmem:[#allocation2 + $0x10] sm:$0xff] %vm237_vm0, %v297_v50 }
 0x158   : > { %298 = vst.msk [vmem:[#allocation2] sm:$0xff] %vm237_vm0, %v295_v51 }
 0x15a   : > { %v302_v52 = vld [vmem:[#allocation2 + $0x8] sm:$0xff] }
 0x15b   : > { %539 = vmatmul.mubr.msk.f32.vlgmr.msra.gmra.mrb[0].mxu1 %vm237_vm0, %v302_v52 }
 0x15c   : > { %541 = vmatprep.mubr.msk.f32.mxu1 %vm702_vm1, %v703_v28 }
 0x15e   : > { %v303_v53 = vld [vmem:[#allocation2 + $0x10] sm:$0xff] }
 0x15f   : > { %v301_v54 = vld [vmem:[#allocation2] sm:$0xff]  ;;  %542 = vmatmul.mubr.msk.f32.gmra.mrb[2].mxu1 %vm237_vm0, %v303_v53 }
 0x160   : > { %536 = vmatmul.mubr.msk.f32.vlgmr.msra.gmra.mrb[0].mxu0 %vm237_vm0, %v301_v54 }
 0x22e   : > { %v389_v55 = vpop.f32.mrb[0].mxu1 }
 0x22f   : > { %400 = vst.msk [vmem:[%s218_s7 + $0x8] sm:$0xff] %vm398_vm2, %v389_v55  ;;  %v540_v56 = vpop.f32.mrb[1].mxu1 }
 0x232   : > { %v394_v57 = vpop.f32.mrb[2].mxu1 }
 0x233   : > { %v384_v58 = vpop.f32.mrb[0].mxu0  ;;  %401 = vst.msk [vmem:[%s218_s7 + $0x10] sm:$0xff] %vm398_vm2, %v394_v57  ;;  %v543_v59 = vpop.f32.mrb[3].mxu1 }
 0x234   : > { %399 = vst.msk [vmem:[%s218_s7] sm:$0xff] %vm398_vm2, %v384_v58  ;;  %v537_v60 = vpop.f32.mrb[1].mxu0 }
 0x235   : > { %634 = shalt.err (!%p631_p5)
}
 0x236   : > { %s635_s22 = scalar_lea.hbm %s831_s11, 384  ;;  %s639_s29 = scalar_lea.hbm %s883_s4, 768 }
 0x237   : > { %p636_p6 = scmp.ne.s32.totalorder %s831_s11, %s635_s22  ;;  %p640_p10 = scmp.lt.u32.totalorder %s831_s11, %s883_s4 }
 0x238   : > { %p641_p11 = scmp.lt.u32.totalorder %s639_s29, %s635_s22  ;;  %p643_p13 = scmp.lt.u32.totalorder %s635_s22, %s831_s11 }
 0x239   : > { %p637_p7 = pnand %p636_p6, %p772_p4 }
 0x23a   : > { %p642_p12 = por %p641_p11, %p640_p10 }
 0x23b   : > { %p638_p9 = pneg %p637_p7 }
 0x23c   : > { %p644_p0 = por %p643_p13, %p642_p12 }
 0x23e   : > { %p645_p1 = pnand %p644_p0, %p638_p9 }
 0x240   : > { %648 = shalt.err (!%p645_p1)
}
 0x241   : > { %s705_s6 = smov 128   ;;  %s706_s7 = smov 8  }
 0x242   : > { %555 = dma.vmem_to_hbm [thread:$0]  (%p772_p4), %s826_s8, 384, %s831_s11, %s833_s18, %s705_s6, %s705_s6, %s706_s7  }
 0x243 PF: > { %p561_p2 = scmp.ge.s32.totalorder %s699_s20, 2  ;;  %s432_s9 = sand.u32 1, %s679_s15  }
 0x244   : > { %s433_s10 = scalar_lea.sflag [#allocation4], %s432_s9 }
 0x245   : > { %p558_p3 = pnand %p561_p2, %p779_p8 }
 0x247   : > { %674 = dma.done.wait (!%p558_p3), %s433_s10, 384  }
 0x248   : > { %676 = vsyncadd (!%p558_p3), %s433_s10, 4294966912  ;;  %s17_s20 = sadd.s32 1, %s699_s20   ;;  %s886_s15 = smov %s683_s16 }
 0x249   : > { %p14_p5 = scmp.ge.s32.totalorder %s17_s20, 4   ;;  %s887_s16 = smov %s687_s17 }
 0x24a   : > { %s888_s17 = smov %s785_s28  ;;  %s889_s18 = smov %s695_s19 }
 0x24b   : > { %s890_s19 = smov %s892_s23  ;;  %16 = sbr.rel (!%p14_p5) target bundleno = 4 (0x4), region = 78 }
 0x252   :  { %438 = vsyncpa [#allocation4], 1 }
 0x253   :  { %440 = vsyncpa [#allocation4 + $0x1], 1 }

</bundles_post_ra>
